<compile_context>
chip_gen: v7x
topology: tpu7x:2x2x1
jax: 0.10.0
libtpu: 0.0.40
codegen_flags: <defaults>
</compile_context>

<pallas_src>
import functools

import jax
import jax.numpy as jnp
from jax.experimental import pallas as pl
from jax.experimental.pallas import tpu as pltpu


# ---------------- Pallas kernel ----------------

def rmsnorm_kernel(x_ref, w_ref, o_ref, *, eps, narrow_mul):
    """RMSNorm over the last dim for one (tm, D) tile of rows."""
    x = x_ref[...].astype(jnp.float32)                       # (tm, D)
    ms = jnp.mean(x * x, axis=-1, keepdims=True)              # (tm, 1) lane reduce (XLU)
    inv = jax.lax.rsqrt(ms + eps)                              # EUP rsqrt
    if narrow_mul:
        # bf16/fp8 path: cast the normalized activation back to the storage
        # dtype before the weight multiply (HF cast order) — halves the
        # full-tile f32 intermediates on v6e/v7x.
        xn = (x * inv).astype(o_ref.dtype)
        o_ref[...] = xn * w_ref[...].astype(o_ref.dtype)
    else:
        # f32 path: exact torch-spec ordering (everything in f32).
        o_ref[...] = (w_ref[...].astype(jnp.float32) * x * inv).astype(o_ref.dtype)


# ---------------- wrapper helpers ----------------

def _tpu_vmem_capacity_bytes() -> int:
    try:
        return int(pltpu.get_tpu_info().vmem_capacity_bytes)
    except Exception:
        return 128 * 1024 * 1024   # v5e/v6e default if query unavailable


def _choose_row_tile(T: int, D: int, itemsize: int, vmem_limit: int) -> int:
    """Row-tile size: multiple of the sublane packing alignment, as large as a
    ~3/4-of-vmem_limit working set allows, while keeping >= 2 grid steps so the
    single 'parallel' axis can shard across TensorCores."""
    packing = max(1, 4 // max(1, itemsize))     # rows packed per sublane
    align = 8 * packing                         # 8 (f32), 16 (bf16), 32 (int8/fp8)

    if T <= align:
        return T                                # tiny input: one (ragged) block

    # Per-row VMEM working set: double-buffered input + double-buffered output
    # (at the storage dtype) plus ~2 full-tile f32 intermediates from the upcast.
    per_row_bytes = D * (4 * itemsize + 8)
    ws_budget = (vmem_limit * 3) // 4
    budget_rows = max(align, ws_budget // per_row_bytes)

    cap = min(budget_rows, T)
    # Keep at least 2 grid steps when possible (dual-TC sharding on v7x).
    half = (pl.cdiv(T, 2) // align) * align
    if half >= align:
        cap = min(cap, half)

    tm = max(align, (cap // align) * align)
    return tm


# ---------------- wrapper ----------------

def rmsnorm(x, weight, eps: float = 1e-6):
    """weight * x * rsqrt(mean(x**2, -1, keepdims=True) + eps), last-dim norm."""
    orig_shape = x.shape
    D = orig_shape[-1]
    T = x.size // D
    x2 = x.reshape(T, D)
    w2 = weight.reshape(1, D)

    itemsize = jnp.dtype(x.dtype).itemsize
    vmem_cap = _tpu_vmem_capacity_bytes()
    # 64 MiB scoped limit on 128-MiB chips (v5e/v6e); ~48 MiB on 64-MiB (v7x).
    vmem_limit = min(64 * 1024 * 1024, (vmem_cap * 3) // 4)

    tm = _choose_row_tile(T, D, itemsize, vmem_limit)
    grid = (pl.cdiv(T, tm),)

    narrow_mul = itemsize < 4   # bf16 / fp8: narrow final multiply+store path

    # TODO(synk): if D is not a multiple of 128 in a real workload, the output
    # store lowers to masked partial stores (vst.msk); fold rows into the lane
    # dim in the wrapper for that case. Typical LLM hidden sizes are fine.
    out = pl.pallas_call(
        functools.partial(rmsnorm_kernel, eps=eps, narrow_mul=narrow_mul),
        out_shape=jax.ShapeDtypeStruct((T, D), x.dtype),
        grid=grid,
        in_specs=[
            pl.BlockSpec((tm, D), lambda i: (i, 0)),   # row tile of x
            pl.BlockSpec((1, D), lambda i: (0, 0)),    # broadcast weight
        ],
        out_specs=pl.BlockSpec((tm, D), lambda i: (i, 0)),
        compiler_params=pltpu.CompilerParams(
            dimension_semantics=("parallel",),          # shard rows across TCs
            vmem_limit_bytes=vmem_limit,
        ),
    )(x2, w2)

    return out.reshape(orig_shape)


# ---------------- demo ----------------

if __name__ == "__main__":
    B, S, D = 2, 8, 32   # batch, seq, hidden

    key = jax.random.PRNGKey(0)
    kx, kw = jax.random.split(key)
    x = jax.random.normal(kx, (B, S, D), jnp.float32)
    # torch module initializes weight to ones; perturb so the multiply is
    # actually exercised.
    weight = jnp.ones((D,), jnp.float32) + 0.1 * jax.random.normal(kw, (D,), jnp.float32)

    out = jax.jit(rmsnorm)(x, weight)
    jax.block_until_ready(out)

    # pure-JAX reference for a correctness sanity check
    ref = weight * x * jax.lax.rsqrt(jnp.mean(x * x, axis=-1, keepdims=True) + 1e-6)
    assert out.shape == (B, S, D)
    assert jnp.allclose(out, ref, atol=1e-5, rtol=1e-5)
    print("KERNEL_OK")
</pallas_src>

<mosaic_0001>
module attributes {stable_mosaic.version = 11 : i64} {
  func.func @rmsnorm_kernel(%arg0: i32, %arg1: memref<8x32xf32, #tpu.memory_space<vmem>>, %arg2: memref<1x32xf32, #tpu.memory_space<vmem>>, %arg3: memref<8x32xf32, #tpu.memory_space<vmem>>) attributes {dimension_semantics = [#tpu.dimension_semantics<parallel>], iteration_bounds = array<i64: 2>, scalar_prefetch = 0 : i64, scratch_operands = 0 : i64, tpu.core_type = #tpu.core_type<tc>, window_params = [{transform_indices = @transform_0, window_bounds = array<i64: 8, 32>}, {pipeline_mode = #tpu.pipeline_mode<synchronous>, transform_indices = @transform_1, window_bounds = array<i64: 1, 32>}, {transform_indices = @transform_2, window_bounds = array<i64: 8, 32>}]} {
    %c0 = arith.constant 0 : index
    %c0_0 = arith.constant 0 : index
    %0 = vector.load %arg1[%c0, %c0_0] : memref<8x32xf32, #tpu.memory_space<vmem>>, vector<8x32xf32>
    %1 = arith.mulf %0, %0 : vector<8x32xf32>
    %cst = arith.constant dense<0.000000e+00> : vector<8xf32>
    %2 = vector.multi_reduction <add>, %1, %cst [1] : vector<8x32xf32> to vector<8xf32>
    %3 = vector.shape_cast %2 : vector<8xf32> to vector<8x1xf32>
    %cst_1 = arith.constant 3.200000e+01 : f32
    %4 = vector.broadcast %cst_1 : f32 to vector<8x1xf32>
    %5 = arith.divf %3, %4 : vector<8x1xf32>
    %cst_2 = arith.constant 9.99999997E-7 : f32
    %6 = vector.broadcast %cst_2 : f32 to vector<8x1xf32>
    %7 = arith.addf %5, %6 : vector<8x1xf32>
    %8 = math.rsqrt %7 : vector<8x1xf32>
    %c0_3 = arith.constant 0 : index
    %c0_4 = arith.constant 0 : index
    %9 = vector.load %arg2[%c0_3, %c0_4] : memref<1x32xf32, #tpu.memory_space<vmem>>, vector<1x32xf32>
    %10 = vector.broadcast %9 : vector<1x32xf32> to vector<8x32xf32>
    %11 = arith.mulf %10, %0 : vector<8x32xf32>
    %12 = vector.broadcast %8 : vector<8x1xf32> to vector<8x32xf32>
    %13 = arith.mulf %11, %12 : vector<8x32xf32>
    %c0_5 = arith.constant 0 : index
    %c0_6 = arith.constant 0 : index
    %14 = vector.load %arg3[%c0_5, %c0_6] : memref<8x32xf32, #tpu.memory_space<vmem>>, vector<8x32xf32>
    tpu.vector_store %arg3[%c0_5, %c0_6], %13 {strides = array<i32>} : memref<8x32xf32, #tpu.memory_space<vmem>>, vector<8x32xf32>,
    return
  }
  func.func @transform_0(%arg0: i32) -> (i32, i32) {
    %c0_i32 = arith.constant 0 : i32
    %c0_i32_0 = arith.constant 0 : i32
    return %arg0, %c0_i32 : i32, i32
  }
  func.func @transform_1(%arg0: i32) -> (i32, i32) {
    %c0_i32 = arith.constant 0 : i32
    %c0_i32_0 = arith.constant 0 : i32
    %c0_i32_1 = arith.constant 0 : i32
    return %c0_i32, %c0_i32_0 : i32, i32
  }
  func.func @transform_2(%arg0: i32) -> (i32, i32) {
    %c0_i32 = arith.constant 0 : i32
    %c0_i32_0 = arith.constant 0 : i32
    return %arg0, %c0_i32 : i32, i32
  }
}

</mosaic_0001>

<bundles_post_ra>
// kernel: rmsnorm.1
= control target key start
LH: loop header
LB: loop body
LE: loop exit
PB: predicated region body
PF: predicated region fallthrough
CT: control target
= control target key end

     0   :  { %7 = vsyncpa [#allocation3], 0  ;;  %s711_s0 = inlined_call_operand.hbm [shape: f32[16,32], index: 0, kind: input, shape index: {}]   ;;  %s712_s1 = inlined_call_operand.hbm [shape: f32[1,32], index: 1, kind: input, shape index: {}]   ;;  %s713_s2 = inlined_call_operand.hbm [shape: f32[16,32], index: 2, kind: output, shape index: {}]  }
   0x1   :  { %9 = vsyncpa [#allocation3 + $0x1], 0 }
   0x2   :  { %10 = vsyncpa [#allocation6], 0 }
   0x3   :  { %11 = vsyncpa [#allocation4], 0 }
   0x4   :  { %13 = vsyncpa [#allocation4 + $0x1], 0  ;;  %s508_s9 = smov 0   ;;  %s510_s10 = smov 0  }
   0x5   :  { %s512_s11 = smov 0   ;;  %s514_s12 = smov 0  }
   0x6 LB: > { %s529_s13 = sadd.s32 4294967295, %s488_s12   ;;  %s286_s14 = sadd.s32 4294967294, %s488_s12   ;;  %s488_s12 = sphi %s514_s12, %s737_s12   ;;  %s484_s11 = sphi %s512_s11, %s736_s11   ;;  %s480_s10 = sphi %s510_s10, %s735_s10   ;;  %s476_s9 = sphi %s508_s9, %s734_s9  }
   0x7   : > { %p39_p0 = scmp.ne.s32.totalorder %s480_s10, %s476_s9  ;;  %p714_p1 = scmp.eq.s32.totalorder %s529_s13, 0 }
   0x8   : > { %p90_p3 = scmp.eq.s32.totalorder %s286_s14, 1  ;;  %p287_p5 = scmp.ge.s32.totalorder %s488_s12, 1 }
   0x9   : > { %p538_p4 = por %p714_p1, %p39_p0  ;;  %p97_p7 = scmp.lt.s32.totalorder %s488_s12, 3 }
   0xa   : > { %p543_p6 = por %p90_p3, %p39_p0  ;;  %s490_s18 = smov [#allocation5]  }
   0xb   : > { %s717_s15 = scalar_select %p538_p4, 1, 0 }
   0xc   : > { %s718_s16 = scalar_select %p543_p6, 1, 0 }
   0xd   : > { %p548_p8 = pnand %p287_p5, %p97_p7  ;;  %s110_s19 = sshll.u32 %s490_s18, 4  ;;  %s111_s19 = int_to_ptr.vmem [resolvable:$true] %s110_s19 }
   0xe   : > { %s556_s20 = sadd.s32 1, %s488_s12   ;;  %s26_s24 = sadd.s32 1, %s484_s11 }
   0xf   : > { %s719_s17 = scalar_select %p548_p8, 1, 0 }
  0x10   : > { %p309_p10 = pneg %p548_p8  ;;  %s23_s22 = ssub.s32 %s488_s12, %s556_s20 }
  0x11   : > { %p566_p12 = scmp.eq.s32.totalorder %s23_s22, 0  ;;  %s360_s27 = scalar_lea.hbm %s712_s1, 16 }
  0x12   : > { %p560_p11 = pnand %p309_p10, %p714_p1  ;;  %p361_p0 = scmp.ne.s32.totalorder %s712_s1, %s360_s27 }
  0x13   : > { %s721_s23 = scalar_select %p566_p12, 1, 0 }
  0x14   : > { %p362_p3 = pneg %p560_p11  ;;  %p367_p10 = scmp.lt.u32.totalorder %s360_s27, %s712_s1 }
  0x16   : > { %p363_p5 = pnand %p362_p3, %p361_p0 }
  0x18   : > { %p364_p7 = pneg %p363_p5 }
  0x1a   : > { %p369_p9 = pnand %p367_p10, %p364_p7 }
  0x1c   : > { %372 = shalt.err (!%p369_p9)
}
  0x1d   : > { %s373_s4 = scalar_lea.vmem %s111_s19, 16  ;;  %s380_s5 = scalar_lea.vmem %s111_s19, 32 }
  0x1e   : > { %p374_p1 = scmp.ne.s32.totalorder %s111_s19, %s373_s4  ;;  %p381_p6 = scmp.lt.s32.totalorder %s111_s19, %s111_s19 }
  0x1f   : > { %p382_p4 = scmp.lt.s32.totalorder %s380_s5, %s373_s4 }
  0x20   : > { %p376_p2 = pnand %p374_p1, %p362_p3 }
  0x21   : > { %p383_p8 = por %p382_p4, %p381_p6 }
  0x22   : > { %p377_p13 = pneg %p376_p2 }
  0x24   : > { %p384_p12 = pnand %p383_p8, %p377_p13 }
  0x26   : > { %387 = shalt.err (!%p384_p12)
}
  0x27   : > { %312 = dma.hbm_to_vmem [thread:$0]  (!%p560_p11), %s712_s1, 16, %s111_s19, [#allocation6]  }
  0x28   : > { %p722_p1 = scmp.ne.s32.totalorder %s721_s23, 0  ;;  %p34_p2 = scmp.eq.s32.totalorder %s488_s12, 0 }
  0x29   : > { %p723_p4 = scmp.ne.s32.totalorder %s484_s11, %s480_s10  ;;  %p724_p6 = scmp.eq.s32.totalorder %s529_s13, 1 }
  0x2a   : > { %s592_s8 = scalar_select %p722_p1, %s484_s11, %s26_s24  }
  0x2b   : > { %p600_p8 = por %p724_p6, %p723_p4  ;;  %p322_p9 = scmp.lt.s32.totalorder %s488_s12, 2 }
  0x2c   : > { %s121_s18 = sand.u32 1, %s484_s11   ;;  %p726_p12 = pmov %p723_p4 }
  0x2d   : > { %s290_s21 = sshll.u32 %s121_s18, 3  ;;  %s291_s22 = sshll.u32 %s488_s12, 7 }
  0x2e   : > { %p35_p13 = por %p34_p2, %p726_p12  ;;  %s613_s19 = scalar_lea.hbm %s711_s0, %s291_s22 }
  0x2f   : > { %s125_s23 = scalar_lea.vmem [#allocation2], %s290_s21  ;;  %s122_s28 = scalar_lea.sflag [#allocation3], %s121_s18 }
  0x30   : > { %s132_s24 = sshll.u32 %s125_s23, 4  ;;  %p615_p11 = pnand %p322_p9, %p35_p13  ;;  %s619_s24 = int_to_ptr.vmem [resolvable:$true] %s132_s24 }
  0x31   : > { %s388_s29 = scalar_lea.hbm %s613_s19, 128  ;;  %s393_s4 = scalar_lea.hbm %s711_s0, 256 }
  0x32   : > { %p389_p0 = scmp.ne.s32.totalorder %s613_s19, %s388_s29  ;;  %p390_p3 = pneg %p615_p11 }
  0x33   : > { %p394_p10 = scmp.lt.u32.totalorder %s613_s19, %s711_s0  ;;  %p395_p1 = scmp.lt.u32.totalorder %s393_s4, %s388_s29 }
  0x34   : > { %p391_p5 = pnand %p390_p3, %p389_p0  ;;  %p397_p4 = scmp.lt.u32.totalorder %s388_s29, %s613_s19 }
  0x35   : > { %p396_p2 = por %p395_p1, %p394_p10 }
  0x36   : > { %p392_p7 = pneg %p391_p5 }
  0x37   : > { %p398_p6 = por %p397_p4, %p396_p2 }
  0x39   : > { %p399_p9 = pnand %p398_p6, %p392_p7 }
  0x3b   : > { %402 = shalt.err (!%p399_p9)
}
  0x3c   : > { %s403_s7 = scalar_lea.vmem %s619_s24, 128  ;;  %s491_s18 = smov [#allocation2]  }
  0x3d   : > { %p404_p12 = scmp.ne.s32.totalorder %s619_s24, %s403_s7  ;;  %s408_s21 = sshll.u32 %s491_s18, 4  ;;  %s409_s21 = int_to_ptr.vmem [resolvable:$false] %s408_s21 }
  0x3e   : > { %s410_s22 = scalar_lea.vmem %s409_s21, 256  ;;  %p411_p5 = scmp.lt.s32.totalorder %s619_s24, %s409_s21 }
  0x3f   : > { %p406_p13 = pnand %p404_p12, %p390_p3  ;;  %p412_p10 = scmp.lt.s32.totalorder %s410_s22, %s403_s7 }
  0x41   : > { %p407_p0 = pneg %p406_p13  ;;  %p413_p1 = por %p412_p10, %p411_p5 }
  0x43   : > { %p414_p2 = pnand %p413_p1, %p407_p0 }
  0x45   : > { %417 = shalt.err (!%p414_p2)
}
  0x46   : > { %316 = dma.hbm_to_vmem [thread:$0]  (!%p615_p11), %s613_s19, 128, %s619_s24, %s122_s28  }
  0x47   : > { %p728_p7 = scmp.ne.s32.totalorder %s719_s17, 0 }
  0x48   : > { %s649_s25 = sand.u32 (!%p728_p7), 1, %s480_s10   ;;  %p729_p3 = scmp.ne.s32.totalorder (!%p728_p7), %s717_s15, 0 }
  0x49   : > { %141 = sbr.rel (%p728_p7) target bundleno = 261 (0x105), region = 28  ;;  %s293_s26 = sshll.u32 (!%p728_p7), %s649_s25, 3 }
  0x4a   : > { %s144_s23 = scalar_lea.sflag (!%p728_p7), [#allocation3], %s649_s25  ;;  %s147_s29 = scalar_lea.vmem (!%p728_p7), [#allocation2], %s293_s26 }
  0x50   : > { %463 = dma.done.wait (%p729_p3), %s144_s23, 128  }
  0x51   : > { %465 = vsyncadd (%p729_p3), %s144_s23, 4294967168  ;;  %p730_p4 = scmp.eq.s32.totalorder %s529_s13, 0 }
  0x53   : > { %467 = dma.done.wait (%p730_p4), [#allocation6], 16   ;;  %p731_p11 = pmov %p730_p4 }
  0x54   : > { %v172_v0 = vld [vmem:[%s147_s29] sm:$0xff]  ;;  %vm174_vm0 = vcmask 261120   ;;  %v296_v6 = vld [vmem:[#allocation5] ss:$0 sm:$0xff]  ;;  %s298_s15 = sshll.u32 %s529_s13, 7  ;;  %s171_s17 = scalar_lea.vmem [#allocation7], %s293_s26 }
  0x55   : > { %469 = vsyncadd (%p731_p11), [#allocation6], 4294967280  ;;  %v173_v1 = vmul.f32 %v172_v0, %v172_v0  ;;  %v189_v7 = vmul.f32 %v296_v6, %v172_v0  ;;  %s206_s19 = sshll.u32 %s171_s17, 4  ;;  %s666_s28 = scalar_lea.hbm %s713_s2, %s298_s15  ;;  %s668_s19 = int_to_ptr.vmem [resolvable:$true] %s206_s19 }
  0x56   : > { %s193_s30 = scalar_lea.sflag [#allocation4], %s649_s25  ;;  %s418_s3 = scalar_lea.vmem %s668_s19, 128 }
  0x57   : > { %v175_v2 = vsel %vm174_vm0, %v173_v1, 0.0  ;;  %p419_p6 = scmp.ne.s32.totalorder %s668_s19, %s418_s3  ;;  %s492_s13 = smov [#allocation7]  }
  0x58   : > { %176 = vadd.xlane.f32.xlu0 %v175_v2  ;;  %s422_s4 = sshll.u32 %s492_s13, 4  ;;  %s423_s4 = int_to_ptr.vmem [resolvable:$false] %s422_s4 }
  0x59   : > { %p420_p9 = pnand %p419_p6, %p600_p8  ;;  %s424_s5 = scalar_lea.vmem %s423_s4, 256 }
  0x5a   : > { %p425_p13 = scmp.lt.s32.totalorder %s668_s19, %s423_s4  ;;  %p426_p0 = scmp.lt.s32.totalorder %s424_s5, %s418_s3 }
  0x5b   : > { %p421_p12 = pneg %p420_p9 }
  0x5c   : > { %p427_p5 = por %p426_p0, %p425_p13 }
  0x5e   : > { %p428_p10 = pnand %p427_p5, %p421_p12 }
  0xe5   : > { %v177_v3 = vpop.xlane.xlu0 %176 }
  0xe6   : > { %v179_v4 = vmul.f32 0.03125, %v177_v3 }
  0xe8   : > { %v180_v5 = vadd.f32 1e-06, %v179_v4 }
  0xea   : > { %358 = vrsqrt.f32 %v180_v5 }
  0xf4   : > { %v359_v8 = vpop.eup %358 }
  0xf5   : > { %v190_v9 = vmul.f32 %v359_v8, %v189_v7 }
  0xf7   : > { %191 = vst.msk [vmem:[%s171_s17] sm:$0xff] %vm174_vm0, %v190_v9 }
  0xf8   : > { %431 = shalt.err (!%p428_p10)
}
  0xf9   : > { %s432_s6 = scalar_lea.hbm %s666_s28, 128  ;;  %s436_s21 = scalar_lea.hbm %s713_s2, 256 }
  0xfa   : > { %p433_p1 = scmp.ne.s32.totalorder %s666_s28, %s432_s6  ;;  %p437_p3 = scmp.lt.u32.totalorder %s666_s28, %s713_s2 }
  0xfb   : > { %p438_p4 = scmp.lt.u32.totalorder %s436_s21, %s432_s6  ;;  %p440_p6 = scmp.lt.u32.totalorder %s432_s6, %s666_s28 }
  0xfc   : > { %p434_p2 = pnand %p433_p1, %p600_p8 }
  0xfd   : > { %p439_p11 = por %p438_p4, %p437_p3 }
  0xfe   : > { %p435_p7 = pneg %p434_p2 }
  0xff   : > { %p441_p9 = por %p440_p6, %p439_p11 }
 0x101   : > { %p442_p12 = pnand %p441_p9, %p435_p7 }
 0x103   : > { %445 = shalt.err (!%p442_p12)
}
 0x104   : > { %307 = dma.vmem_to_hbm [thread:$0]  (%p600_p8), %s668_s19, 128, %s666_s28, %s193_s30  }
 0x105 PF: > { %s218_s26 = sand.u32 1, %s476_s9   ;;  %p732_p13 = scmp.ne.s32.totalorder %s718_s16, 0 }
 0x106   : > { %p733_p0 = scmp.ge.s32.totalorder %s488_s12, 2  ;;  %s219_s23 = scalar_lea.sflag [#allocation4], %s218_s26 }
 0x108   : > { %p318_p5 = pnand %p733_p0, %p732_p13 }
 0x10a   : > { %471 = dma.done.wait (!%p318_p5), %s219_s23, 128  }
 0x10b   : > { %473 = vsyncadd (!%p318_p5), %s219_s23, 4294967168  ;;  %p16_p10 = scmp.ge.s32.totalorder %s556_s20, 4   ;;  %s734_s9 = smov %s480_s10 }
 0x10c   : > { %s735_s10 = smov %s484_s11  ;;  %s736_s11 = smov %s592_s8 }
 0x10d   : > { %s737_s12 = smov %s556_s20  ;;  %18 = sbr.rel (!%p16_p10) target bundleno = 6 (0x6), region = 77 }
 0x114   :  { %224 = vsyncpa [#allocation3], 1 }
 0x115   :  { %226 = vsyncpa [#allocation3 + $0x1], 1 }
 0x116   :  { %227 = vsyncpa [#allocation6], 1 }
 0x117   :  { %228 = vsyncpa [#allocation4], 1 }
 0x118   :  { %230 = vsyncpa [#allocation4 + $0x1], 1 }

</bundles_post_ra>
